<compile_context>
chip_gen: v5e
topology: v5e:2x2
jax: 0.10.0
libtpu: 0.0.40
codegen_flags: <defaults>
</compile_context>

<pallas_src>
import jax
import jax.numpy as jnp
from jax.experimental import pallas as pl
from jax.experimental.pallas import tpu as pltpu

LANE = 128  # TPU lane width: internal feature dims padded to a multiple of this.


def _round_up(n, m):
    return ((n + m - 1) // m) * m


def _pad2(a, rows, cols, dtype):
    """Zero-pad a 2-D array to (rows, cols) and cast to dtype."""
    out = jnp.zeros((rows, cols), dtype)
    return out.at[: a.shape[0], : a.shape[1]].set(a.astype(dtype))


def _choose_batch_tile(B):
    """Batch tile: multiple of 16 (bf16 sublane packing), capped at 1024, and
    split into >= 2 grid steps for mid/large batches (v7x megacore)."""
    Bp16 = _round_up(max(B, 1), 16)
    if Bp16 >= 2048:
        return 1024                              # >= 2 (usually >= 4) steps
    if Bp16 >= 256:
        return _round_up((Bp16 + 1) // 2, 16)    # exactly ~2 steps, each >= 128 rows
    return Bp16                                  # small batch: single step


def prepare_params(params, compute_dtype=jnp.bfloat16):
    """Pad & cast the weights ONCE (hoisted out of the per-call forward path).

    params: (w1[S,F1], b1[F1], w2[F1,F2], b2[F2], wq[F2,A], bq[A]) in f32.
    Returns VMEM-friendly tensors:
      w1p[S, F1p] bf16, b1p[1, F1p] f32,
      w2p[F1p, F2p] bf16, b2p[1, F2p] f32,
      wqp[F2p, A] bf16 (K padded, N kept at real A), bqp[1, A] f32.
    """
    w1, b1, w2, b2, wq, bq = params
    S, F1 = w1.shape
    F2 = w2.shape[1]
    A = wq.shape[1]
    F1p, F2p = _round_up(F1, LANE), _round_up(F2, LANE)

    w1p = _pad2(w1, S, F1p, compute_dtype)      # K = S left unpadded (state streamed raw)
    w2p = _pad2(w2, F1p, F2p, compute_dtype)
    wqp = _pad2(wq, F2p, A, compute_dtype)      # N = A left unpadded (narrow output store)
    b1p = _pad2(b1.reshape(1, -1), 1, F1p, jnp.float32)
    b2p = _pad2(b2.reshape(1, -1), 1, F2p, jnp.float32)
    bqp = bq.reshape(1, A).astype(jnp.float32)
    return (w1p, b1p, w2p, b2p, wqp, bqp)


def dqn_kernel(x_ref, w1_ref, b1_ref, w2_ref, b2_ref, wq_ref, bq_ref, q_ref):
    # x: f32 [TB, S] (unpadded) -> cast to bf16 in-kernel for the MXU.
    x = x_ref[...].astype(w1_ref.dtype)
    h1 = jnp.dot(x, w1_ref[...], preferred_element_type=jnp.float32)   # MXU, f32 acc
    h1 = jnp.maximum(h1 + b1_ref[...], 0.0)                            # f32 bias+ReLU (VPU)
    h2 = jnp.dot(h1.astype(w2_ref.dtype), w2_ref[...],
                 preferred_element_type=jnp.float32)
    h2 = jnp.maximum(h2 + b2_ref[...], 0.0)
    q = jnp.dot(h2.astype(wq_ref.dtype), wq_ref[...],
                preferred_element_type=jnp.float32)
    q_ref[...] = q + bq_ref[...]                                       # (TB, A) f32 store


def dqn_forward(state, prepared_params):
    """Fused 3-layer MLP forward. state: [B, S] f32. Returns q: [B, A] f32.

    `prepared_params` must come from prepare_params() (padded/cast once)."""
    w1p, b1p, w2p, b2p, wqp, bqp = prepared_params
    B, S = state.shape
    F1p, F2p, A = w1p.shape[1], w2p.shape[1], wqp.shape[1]

    TB = _choose_batch_tile(B)
    Bp = _round_up(B, TB)
    if Bp != B:  # only the (cheap) batch pad remains in the per-call path
        state = jnp.pad(state, ((0, Bp - B), (0, 0)))

    def resident(shape):  # weights/biases: same block every step -> VMEM-resident
        return pl.BlockSpec(shape, lambda i: (0, 0))

    q_pad = pl.pallas_call(
        dqn_kernel,
        out_shape=jax.ShapeDtypeStruct((Bp, A), jnp.float32),
        grid=(Bp // TB,),
        in_specs=[
            pl.BlockSpec((TB, S), lambda i: (i, 0)),   # state tile: pipelined over batch
            resident((S, F1p)), resident((1, F1p)),
            resident((F1p, F2p)), resident((1, F2p)),
            resident((F2p, A)), resident((1, A)),
        ],
        out_specs=pl.BlockSpec((TB, A), lambda i: (i, 0)),
        compiler_params=pltpu.CompilerParams(
            dimension_semantics=("parallel",)),        # batch axis across v7x's 2 TCs
    )(state, w1p, b1p, w2p, b2p, wqp, bqp)

    return q_pad[:B]  # drop padded batch rows (A is already the real width)


def init_linear(key, fan_in, fan_out):
    # PyTorch nn.Linear default init: U(-1/sqrt(fan_in), +1/sqrt(fan_in)).
    kw, kb = jax.random.split(key)
    bound = 1.0 / jnp.sqrt(jnp.float32(fan_in))
    w = jax.random.uniform(kw, (fan_in, fan_out), jnp.float32, -bound, bound)
    b = jax.random.uniform(kb, (fan_out,), jnp.float32, -bound, bound)
    return w, b


if __name__ == "__main__":
    # Shapes consistent with DeepQNetwork(alpha, state_dim=8, action_dim=4,
    # fc1_dim=32, fc2_dim=32), batch=2.
    # TODO(synk): optimizer (Adam) and checkpoint save/load are host-side and
    # not part of the forward pass; only forward() is implemented as a kernel.
    state_dim, fc1_dim, fc2_dim, action_dim = 8, 32, 32, 4
    batch = 2

    key = jax.random.PRNGKey(0)
    k_x, k1, k2, k3 = jax.random.split(key, 4)

    state = jax.random.normal(k_x, (batch, state_dim), jnp.float32)
    w1, b1 = init_linear(k1, state_dim, fc1_dim)
    w2, b2 = init_linear(k2, fc1_dim, fc2_dim)
    wq, bq = init_linear(k3, fc2_dim, action_dim)
    params = (w1, b1, w2, b2, wq, bq)

    # Pad/cast the weights ONCE (stays on device, reused every forward call).
    prepared = jax.tree_util.tree_map(jax.device_put, prepare_params(params))

    fwd = jax.jit(dqn_forward)
    q = jax.block_until_ready(fwd(state, prepared))
    assert q.shape == (batch, action_dim)

    # Reference 1: exact same math as the kernel (bf16 matmul inputs, f32 acc).
    bf = jnp.bfloat16
    h1m = jnp.maximum(
        jnp.dot(state.astype(bf), w1.astype(bf), preferred_element_type=jnp.float32) + b1, 0.0)
    h2m = jnp.maximum(
        jnp.dot(h1m.astype(bf), w2.astype(bf), preferred_element_type=jnp.float32) + b2, 0.0)
    q_match = jnp.dot(h2m.astype(bf), wq.astype(bf), preferred_element_type=jnp.float32) + bq
    assert jnp.allclose(q, q_match, atol=1e-3, rtol=1e-3)

    # Reference 2: full-f32 module semantics (loose tolerance absorbs bf16 inputs).
    h1 = jnp.maximum(state @ w1 + b1, 0.0)
    h2 = jnp.maximum(h1 @ w2 + b2, 0.0)
    q_f32 = h2 @ wq + bq
    assert jnp.allclose(q, q_f32, atol=1e-1, rtol=1e-1)

    print("KERNEL_OK")
</pallas_src>

<mosaic_0001>
module attributes {stable_mosaic.version = 11 : i64} {
  func.func @dqn_kernel(%arg0: i32, %arg1: memref<16x8xf32, #tpu.memory_space<vmem>>, %arg2: memref<8x128xbf16, #tpu.memory_space<vmem>>, %arg3: memref<1x128xf32, #tpu.memory_space<vmem>>, %arg4: memref<128x128xbf16, #tpu.memory_space<vmem>>, %arg5: memref<1x128xf32, #tpu.memory_space<vmem>>, %arg6: memref<128x4xbf16, #tpu.memory_space<vmem>>, %arg7: memref<1x4xf32, #tpu.memory_space<vmem>>, %arg8: memref<16x4xf32, #tpu.memory_space<vmem>>) attributes {dimension_semantics = [#tpu.dimension_semantics<parallel>], iteration_bounds = array<i64: 1>, scalar_prefetch = 0 : i64, scratch_operands = 0 : i64, tpu.core_type = #tpu.core_type<tc>, window_params = [{transform_indices = @transform_0, window_bounds = array<i64: 16, 8>}, {pipeline_mode = #tpu.pipeline_mode<synchronous>, transform_indices = @transform_1, window_bounds = array<i64: 8, 128>}, {pipeline_mode = #tpu.pipeline_mode<synchronous>, transform_indices = @transform_2, window_bounds = array<i64: 1, 128>}, {pipeline_mode = #tpu.pipeline_mode<synchronous>, transform_indices = @transform_3, window_bounds = array<i64: 128, 128>}, {pipeline_mode = #tpu.pipeline_mode<synchronous>, transform_indices = @transform_4, window_bounds = array<i64: 1, 128>}, {pipeline_mode = #tpu.pipeline_mode<synchronous>, transform_indices = @transform_5, window_bounds = array<i64: 128, 4>}, {pipeline_mode = #tpu.pipeline_mode<synchronous>, transform_indices = @transform_6, window_bounds = array<i64: 1, 4>}, {transform_indices = @transform_7, window_bounds = array<i64: 16, 4>}]} {
    %c0 = arith.constant 0 : index
    %c0_0 = arith.constant 0 : index
    %0 = vector.load %arg1[%c0, %c0_0] : memref<16x8xf32, #tpu.memory_space<vmem>>, vector<16x8xf32>
    %1 = arith.truncf %0 : vector<16x8xf32> to vector<16x8xbf16>
    %c0_1 = arith.constant 0 : index
    %c0_2 = arith.constant 0 : index
    %2 = vector.load %arg2[%c0_1, %c0_2] : memref<8x128xbf16, #tpu.memory_space<vmem>>, vector<8x128xbf16>
    %cst = arith.constant dense<0.000000e+00> : vector<16x128xf32>
    %3 = tpu.matmul %1, %2, %cst {dimension_numbers = #tpu.dot_dimension_numbers<[1], [0], [0], [1], [0, 0, 1, 1], [], []>} : vector<16x8xbf16>, vector<8x128xbf16>, vector<16x128xf32> -> vector<16x128xf32>
    %c0_3 = arith.constant 0 : index
    %c0_4 = arith.constant 0 : index
    %4 = vector.load %arg3[%c0_3, %c0_4] : memref<1x128xf32, #tpu.memory_space<vmem>>, vector<1x128xf32>
    %5 = vector.broadcast %4 : vector<1x128xf32> to vector<16x128xf32>
    %6 = arith.addf %3, %5 : vector<16x128xf32>
    %cst_5 = arith.constant 0.000000e+00 : f32
    %7 = vector.broadcast %cst_5 : f32 to vector<16x128xf32>
    %8 = arith.maximumf %6, %7 : vector<16x128xf32>
    %9 = arith.truncf %8 : vector<16x128xf32> to vector<16x128xbf16>
    %c0_6 = arith.constant 0 : index
    %c0_7 = arith.constant 0 : index
    %10 = vector.load %arg4[%c0_6, %c0_7] : memref<128x128xbf16, #tpu.memory_space<vmem>>, vector<128x128xbf16>
    %cst_8 = arith.constant dense<0.000000e+00> : vector<16x128xf32>
    %11 = tpu.matmul %9, %10, %cst_8 {dimension_numbers = #tpu.dot_dimension_numbers<[1], [0], [0], [1], [0, 0, 1, 1], [], []>} : vector<16x128xbf16>, vector<128x128xbf16>, vector<16x128xf32> -> vector<16x128xf32>
    %c0_9 = arith.constant 0 : index
    %c0_10 = arith.constant 0 : index
    %12 = vector.load %arg5[%c0_9, %c0_10] : memref<1x128xf32, #tpu.memory_space<vmem>>, vector<1x128xf32>
    %13 = vector.broadcast %12 : vector<1x128xf32> to vector<16x128xf32>
    %14 = arith.addf %11, %13 : vector<16x128xf32>
    %cst_11 = arith.constant 0.000000e+00 : f32
    %15 = vector.broadcast %cst_11 : f32 to vector<16x128xf32>
    %16 = arith.maximumf %14, %15 : vector<16x128xf32>
    %17 = arith.truncf %16 : vector<16x128xf32> to vector<16x128xbf16>
    %c0_12 = arith.constant 0 : index
    %c0_13 = arith.constant 0 : index
    %18 = vector.load %arg6[%c0_12, %c0_13] : memref<128x4xbf16, #tpu.memory_space<vmem>>, vector<128x4xbf16>
    %cst_14 = arith.constant dense<0.000000e+00> : vector<16x4xf32>
    %19 = tpu.matmul %17, %18, %cst_14 {dimension_numbers = #tpu.dot_dimension_numbers<[1], [0], [0], [1], [0, 0, 1, 1], [], []>} : vector<16x128xbf16>, vector<128x4xbf16>, vector<16x4xf32> -> vector<16x4xf32>
    %c0_15 = arith.constant 0 : index
    %c0_16 = arith.constant 0 : index
    %20 = vector.load %arg7[%c0_15, %c0_16] : memref<1x4xf32, #tpu.memory_space<vmem>>, vector<1x4xf32>
    %21 = vector.broadcast %20 : vector<1x4xf32> to vector<16x4xf32>
    %22 = arith.addf %19, %21 : vector<16x4xf32>
    %c0_17 = arith.constant 0 : index
    %c0_18 = arith.constant 0 : index
    %23 = vector.load %arg8[%c0_17, %c0_18] : memref<16x4xf32, #tpu.memory_space<vmem>>, vector<16x4xf32>
    tpu.vector_store %arg8[%c0_17, %c0_18], %22 {strides = array<i32>} : memref<16x4xf32, #tpu.memory_space<vmem>>, vector<16x4xf32>,
    return
  }
  func.func @transform_0(%arg0: i32) -> (i32, i32) {
    %c0_i32 = arith.constant 0 : i32
    %c0_i32_0 = arith.constant 0 : i32
    return %arg0, %c0_i32 : i32, i32
  }
  func.func @transform_1(%arg0: i32) -> (i32, i32) {
    %c0_i32 = arith.constant 0 : i32
    %c0_i32_0 = arith.constant 0 : i32
    %c0_i32_1 = arith.constant 0 : i32
    return %c0_i32, %c0_i32_0 : i32, i32
  }
  func.func @transform_2(%arg0: i32) -> (i32, i32) {
    %c0_i32 = arith.constant 0 : i32
    %c0_i32_0 = arith.constant 0 : i32
    %c0_i32_1 = arith.constant 0 : i32
    return %c0_i32, %c0_i32_0 : i32, i32
  }
  func.func @transform_3(%arg0: i32) -> (i32, i32) {
    %c0_i32 = arith.constant 0 : i32
    %c0_i32_0 = arith.constant 0 : i32
    %c0_i32_1 = arith.constant 0 : i32
    return %c0_i32, %c0_i32_0 : i32, i32
  }
  func.func @transform_4(%arg0: i32) -> (i32, i32) {
    %c0_i32 = arith.constant 0 : i32
    %c0_i32_0 = arith.constant 0 : i32
    %c0_i32_1 = arith.constant 0 : i32
    return %c0_i32, %c0_i32_0 : i32, i32
  }
  func.func @transform_5(%arg0: i32) -> (i32, i32) {
    %c0_i32 = arith.constant 0 : i32
    %c0_i32_0 = arith.constant 0 : i32
    %c0_i32_1 = arith.constant 0 : i32
    return %c0_i32, %c0_i32_0 : i32, i32
  }
  func.func @transform_6(%arg0: i32) -> (i32, i32) {
    %c0_i32 = arith.constant 0 : i32
    %c0_i32_0 = arith.constant 0 : i32
    %c0_i32_1 = arith.constant 0 : i32
    return %c0_i32, %c0_i32_0 : i32, i32
  }
  func.func @transform_7(%arg0: i32) -> (i32, i32) {
    %c0_i32 = arith.constant 0 : i32
    %c0_i32_0 = arith.constant 0 : i32
    return %arg0, %c0_i32 : i32, i32
  }
}

</mosaic_0001>

<bundles_post_ra>
// kernel: dqn_forward.1
= control target key start
LH: loop header
LB: loop body
LE: loop exit
PB: predicated region body
PF: predicated region fallthrough
CT: control target
= control target key end

     0   :  { %vm39_vm0 = vcmask 1043456   ;;  %vm35_vm1 = vcmask 64512   ;;  %vm227_vm2 = vcmask 31744   ;;  %s430_s1 = inlined_call_operand.vmem [shape: bf16[8,128], index: 1, kind: input, shape index: {}]   ;;  %s431_s0 = inlined_call_operand.vmem [shape: f32[16,8], index: 0, kind: input, shape index: {}]   ;;  %s432_s3 = inlined_call_operand.vmem [shape: bf16[128,128], index: 3, kind: input, shape index: {}]   ;;  %s433_s2 = inlined_call_operand.vmem [shape: f32[1,128], index: 2, kind: input, shape index: {}]   ;;  %s434_s4 = inlined_call_operand.vmem [shape: f32[1,128], index: 4, kind: input, shape index: {}]   ;;  %s435_s5 = inlined_call_operand.vmem [shape: bf16[128,4], index: 5, kind: input, shape index: {}]   ;;  %s436_s6 = inlined_call_operand.vmem [shape: f32[1,4], index: 6, kind: input, shape index: {}]   ;;  %s437_s7 = inlined_call_operand.vmem [shape: f32[16,4], index: 7, kind: output, shape index: {}]  }
   0x1   :  { %v30_v0 = vld [vmem:[%s430_s1] sm:$0xf]  ;;  %v28_v2 = vld [vmem:[%s431_s0 + $0x8] sm:$0xff]  ;;  %v306_v5 = vld [vmem:[%s432_s3 + $0x38] sm:$0xff] }
   0x2   :  { %v27_v1 = vld [vmem:[%s431_s0] sm:$0xff]  ;;  %v41_v3 = vsel %vm39_vm0, %v30_v0, 0  ;;  %128 = vmatpush.bf16.msra.mxu1 %v306_v5  ;;  %v305_v6 = vld [vmem:[%s432_s3 + $0x30] sm:$0xff]  ;;  %v304_v7 = vld [vmem:[%s432_s3 + $0x28] sm:$0xff] }
   0x3   :  { %v29_v4 = vpack.c.bf16 %v28_v2, %v27_v1  ;;  %50 = vmatpush.bf16.msra.mxu0 %v41_v3  ;;  %v303_v8 = vld [vmem:[%s432_s3 + $0x20] sm:$0xff]  ;;  %v302_v9 = vld [vmem:[%s432_s3 + $0x18] sm:$0xff]  ;;  %v301_v10 = vld [vmem:[%s432_s3 + $0x10] sm:$0xff] }
   0x4   :  { %v300_v11 = vld [vmem:[%s432_s3 + $0x8] sm:$0xff]  ;;  %v299_v12 = vld [vmem:[%s432_s3] sm:$0xff]  ;;  %v314_v13 = vld [vmem:[%s435_s5 + $0x38] sm:$0xff] }
   0x5   :  { %213 = vmatpush.bf16.msra.mxu2 %v314_v13  ;;  %v313_v14 = vld [vmem:[%s435_s5 + $0x30] sm:$0xff]  ;;  %v312_v15 = vld [vmem:[%s435_s5 + $0x28] sm:$0xff]  ;;  %v311_v16 = vld [vmem:[%s435_s5 + $0x20] sm:$0xff] }
   0x6   :  { %234 = vmatmul.msk.bf16.vlgmr.msra.gmra.mxu0 %vm35_vm1, %v29_v4  ;;  %129 = vmatpush.bf16.msra.mxu1 %v305_v6  ;;  %v315_v18 = vld [vmem:[%s433_s2] ss:$0 sm:$0xff]  ;;  %v310_v25 = vld [vmem:[%s435_s5 + $0x18] sm:$0xff]  ;;  %v309_v26 = vld [vmem:[%s435_s5 + $0x10] sm:$0xff] }
   0x7   :  { %v308_v27 = vld [vmem:[%s435_s5 + $0x8] sm:$0xff]  ;;  %v307_v28 = vld [vmem:[%s435_s5] sm:$0xff] }
   0x8   :  { %v316_v30 = vld [vmem:[%s434_s4] ss:$0 sm:$0xff] }
   0x9   :  { %214 = vmatpush.bf16.msra.mxu2 %v313_v14  ;;  %v317_v37 = vld [vmem:[%s436_s6] ss:$0 sm:$0xff] }
   0xa   :  { %130 = vmatpush.bf16.msra.mxu1 %v304_v7 }
   0xd   :  { %215 = vmatpush.bf16.msra.mxu2 %v312_v15 }
   0xe   :  { %131 = vmatpush.bf16.msra.mxu1 %v303_v8 }
  0x11   :  { %216 = vmatpush.bf16.msra.mxu2 %v311_v16 }
  0x12   :  { %132 = vmatpush.bf16.msra.mxu1 %v302_v9 }
  0x15   :  { %217 = vmatpush.bf16.msra.mxu2 %v310_v25 }
  0x16   :  { %133 = vmatpush.bf16.msra.mxu1 %v301_v10 }
  0x19   :  { %218 = vmatpush.bf16.msra.mxu2 %v309_v26 }
  0x1a   :  { %134 = vmatpush.bf16.msra.mxu1 %v300_v11 }
  0x1d   :  { %219 = vmatpush.bf16.msra.mxu2 %v308_v27 }
  0x1e   :  { %135 = vmatpush.bf16.msra.mxu1 %v299_v12 }
  0x21   :  { %220 = vmatpush.bf16.msra.mxu2 %v307_v28 }
  0x83   :  { %v52_v17 = vpop.f32.mrf.mxu0 }
  0x84   :  { %v53_v19 = vadd.f32 %v315_v18, %v52_v17 }
  0x86   :  { %v57_v22 = vmax.f32 %v53_v19, 0.0 }
  0x8b   :  { %v54_v20 = vpop.f32.mrf.mxu0 }
  0x8c   :  { %v55_v21 = vadd.f32 %v315_v18, %v54_v20 }
  0x8e   :  { %v58_v23 = vmax.f32 %v55_v21, 0.0 }
  0x90   :  { %v59_v24 = vpack.c.bf16 %v58_v23, %v57_v22 }
  0x92   :  { %136 = vmatmul.bf16.vlgmr.msra.gmra.mxu1 %v59_v24 }
 0x10f   :  { %v137_v29 = vpop.f32.mrf.mxu1 }
 0x110   :  { %v138_v31 = vadd.f32 %v316_v30, %v137_v29 }
 0x112   :  { %v142_v34 = vmax.f32 %v138_v31, 0.0 }
 0x117   :  { %v139_v32 = vpop.f32.mrf.mxu1 }
 0x118   :  { %v140_v33 = vadd.f32 %v316_v30, %v139_v32 }
 0x11a   :  { %v143_v35 = vmax.f32 %v140_v33, 0.0 }
 0x11c   :  { %v144_v36 = vpack.c.bf16 %v143_v35, %v142_v34 }
 0x11e   :  { %221 = vmatmul.bf16.vlgmr.msra.gmra.mxu2 %v144_v36 }
 0x1a1   :  { %v222_v38 = vpop.f32.mrf.mxu2 }
 0x1a2   :  { %v223_v39 = vadd.f32 %v317_v37, %v222_v38 }
 0x1a4   :  { %228 = vst.msk [vmem:[%s437_s7] sm:$0xff] %vm227_vm2, %v223_v39 }
 0x1a9   :  { %v224_v40 = vpop.f32.mrf.mxu2 }
 0x1aa   :  { %v225_v41 = vadd.f32 %v317_v37, %v224_v40 }
 0x1ac   :  { %229 = vst.msk [vmem:[%s437_s7 + $0x8] sm:$0xff] %vm227_vm2, %v225_v41 }

</bundles_post_ra>
